<compile_context>
chip_gen: v7x
topology: tpu7x:2x2x1
jax: 0.10.0
libtpu: 0.0.40
codegen_flags: <defaults>
</compile_context>

<pallas_src>
import math

import jax
import jax.numpy as jnp
from jax import lax
from jax.experimental import pallas as pl
from jax.experimental.pallas import tpu as pltpu

_TILE_N_MAX = 4096                       # rows per grid step (multiple of 128)
_FEATS_VMEM_BUDGET = 12 * 1024 * 1024    # budget for the double-buffered feature stream
_SH_C0 = 0.28209479177387814             # constant SH term (folded into bias)


def _round_up(v, m):
    return (v + m - 1) // m * m


def _sh4_terms_no_const(x, y, z):
    """Degree-4 real spherical harmonics (tcnn convention) WITHOUT the constant
    term (folded into the first-layer bias).  15 terms, same shape as x."""
    xx, yy, zz = x * x, y * y, z * z
    xy, yz, xz = x * y, y * z, x * z
    return [
        -0.48860251190291987 * y,
        0.48860251190291987 * z,
        -0.48860251190291987 * x,
        1.0925484305920792 * xy,
        -1.0925484305920792 * yz,
        0.94617469575755997 * zz - 0.31539156525251999,
        -1.0925484305920792 * xz,
        0.54627421529603959 * (xx - yy),
        0.59004358992664352 * y * (yy - 3.0 * xx),
        2.8906114426405538 * xy * z,
        0.45704579946446572 * y * (1.0 - 5.0 * zz),
        0.3731763325901154 * z * (5.0 * zz - 3.0),
        0.45704579946446572 * x * (1.0 - 5.0 * zz),
        1.4453057213202769 * z * (xx - yy),
        0.59004358992664352 * x * (3.0 * yy - xx),
    ]


def _sh4_terms_full(x, y, z):
    return [jnp.full_like(x, _SH_C0)] + _sh4_terms_no_const(x, y, z)


def _radiance_kernel(feats_ref, dirs_ref, w1f_ref, w1s_ref, b1_ref,
                     w2_ref, b2_ref, w3_ref, b3_ref, out_ref, sh_ref):
    # feats_ref: [TILE_N, F]  (natural layout, native dtype; cast in-kernel)
    # dirs_ref:  [3, TILE_N]  (rows on the lane axis -> lane-dense SH math)
    # out_ref:   [3, TILE_N]  (lane-dense output stores)
    # weights: bf16, torch Linear layout [out, in]; biases: f32 [out, 1]
    # sh_ref:  VMEM scratch [15, TILE_N] f32
    d = dirs_ref[...].astype(jnp.float32)
    d = ((d + 1.0) * 0.5) * 2.0 - 1.0      # module -> [0,1]; tcnn SH -> [-1,1]
    x = d[0:1, :]
    y = d[1:2, :]
    z = d[2:3, :]

    # Lane-dense SH evaluation; constant term was folded into b1 in the wrapper.
    terms = _sh4_terms_no_const(x, y, z)
    for i, t in enumerate(terms):
        sh_ref[i:i + 1, :] = t
    sh = sh_ref[...].astype(jnp.bfloat16)          # [15, TILE_N]

    f = feats_ref[...].astype(jnp.bfloat16)        # [TILE_N, F]

    # Split first layer (no materialized concat); NT dot keeps result [H1, TILE_N].
    h1 = (lax.dot_general(w1f_ref[...], f,
                          dimension_numbers=(((1,), (1,)), ((), ())),
                          preferred_element_type=jnp.float32)
          + jnp.dot(w1s_ref[...], sh, preferred_element_type=jnp.float32)
          + b1_ref[...])
    h1 = jnp.maximum(h1, 0.0).astype(jnp.bfloat16)

    h2 = jnp.dot(w2_ref[...], h1, preferred_element_type=jnp.float32) + b2_ref[...]
    h2 = jnp.maximum(h2, 0.0).astype(jnp.bfloat16)

    c = jnp.dot(w3_ref[...], h2, preferred_element_type=jnp.float32) + b3_ref[...]
    # sigmoid -> exp on the EUP slot (free next to the VALU-heavy SH math)
    out_ref[...] = jax.nn.sigmoid(c).astype(out_ref.dtype)


@jax.jit
def volume_radiance_forward(features, dirs, w1, b1, w2, b2, w3, b3):
    """Pallas forward of VolumeRadianceMask.

    features: [..., F]; dirs: [..., 3] (unit directions in [-1, 1]).
    Weights in torch nn.Linear layout: w1 [H1, F+16], w2 [H2, H1], w3 [3, H2].
    Returns color [..., 3] float32 in (0, 1).
    """
    batch_shape = features.shape[:-1]
    feat_dim = features.shape[-1]
    n_dir = dirs.shape[-1]
    n_rows = math.prod(batch_shape) if batch_shape else 1

    h1_dim = w1.shape[0]
    h2_dim = w2.shape[0]
    out_dim = w3.shape[0]
    sh_dim = w1.shape[1] - feat_dim        # 16 for deg-4 SH
    sh_var = sh_dim - 1                    # 15 non-constant terms

    # Features: natural [N, F] layout, native dtype -> zero wrapper HBM passes.
    feats = features.reshape(n_rows, feat_dim)
    # Dirs: cheap [N,3] -> [3,N] transpose so SH math / output are lane-dense.
    dirs_t = dirs.reshape(n_rows, n_dir).T

    # Tile selection: as large as the VMEM budget allows, capped at _TILE_N_MAX,
    # and shrunk so the "parallel" grid axis has >= 2 steps (v7x: 2 TensorCores).
    feat_bytes = jnp.dtype(features.dtype).itemsize
    vmem_cap = max(
        128, (_FEATS_VMEM_BUDGET // (2 * max(feat_dim, 1) * feat_bytes)) // 128 * 128)
    tile = min(_TILE_N_MAX, _round_up(n_rows, 128), vmem_cap)
    if n_rows > 128 and pl.cdiv(n_rows, tile) < 2:
        tile = min(tile, _round_up(pl.cdiv(n_rows, 2), 128))
    grid = (pl.cdiv(n_rows, tile),)        # ragged last block handled by Pallas

    # Weight prep (tiny tensors): bf16 MXU operands, f32 biases; split layer 1
    # and fold the constant SH term into the bias.
    w1_f32 = w1.astype(jnp.float32)
    w1f = w1_f32[:, :feat_dim].astype(jnp.bfloat16)              # [H1, F]
    w1s = w1_f32[:, feat_dim + 1:].astype(jnp.bfloat16)          # [H1, 15]
    b1c = (b1.astype(jnp.float32)
           + _SH_C0 * w1_f32[:, feat_dim]).reshape(h1_dim, 1)
    w2b = w2.astype(jnp.bfloat16)
    b2c = b2.reshape(h2_dim, 1).astype(jnp.float32)
    w3b = w3.astype(jnp.bfloat16)
    b3c = b3.reshape(out_dim, 1).astype(jnp.float32)

    stream_rows = lambda i: (i, 0)   # features: tiles along the sublane (row) axis
    stream_cols = lambda i: (0, i)   # dirs / out: tiles along the lane axis
    resident = lambda i: (0, 0)      # same block every step -> weights stay in VMEM

    out_t = pl.pallas_call(
        _radiance_kernel,
        out_shape=jax.ShapeDtypeStruct((out_dim, n_rows), jnp.float32),
        grid_spec=pltpu.PrefetchScalarGridSpec(
            num_scalar_prefetch=0,
            grid=grid,
            in_specs=[
                pl.BlockSpec((tile, feat_dim), stream_rows),   # features [N, F]
                pl.BlockSpec((n_dir, tile), stream_cols),      # dirs^T   [3, N]
                pl.BlockSpec((h1_dim, feat_dim), resident),
                pl.BlockSpec((h1_dim, sh_var), resident),
                pl.BlockSpec((h1_dim, 1), resident),
                pl.BlockSpec((h2_dim, h1_dim), resident),
                pl.BlockSpec((h2_dim, 1), resident),
                pl.BlockSpec((out_dim, h2_dim), resident),
                pl.BlockSpec((out_dim, 1), resident),
            ],
            out_specs=pl.BlockSpec((out_dim, tile), stream_cols),
            scratch_shapes=[pltpu.VMEM((sh_var, tile), jnp.float32)],
        ),
        compiler_params=pltpu.CompilerParams(
            dimension_semantics=("parallel",),       # shard row tiles across TCs
            vmem_limit_bytes=32 * 1024 * 1024,
        ),
    )(feats, dirs_t, w1f, w1s, b1c, w2b, b2c, w3b, b3c)

    color = out_t.T.reshape(*batch_shape, out_dim)
    return color.astype(jnp.float32)


def volume_radiance_reference(features, dirs, w1, b1, w2, b2, w3, b3):
    """Pure-JAX f32 reference matching the PyTorch module."""
    feat_dim = features.shape[-1]
    n_dir = dirs.shape[-1]
    batch_shape = features.shape[:-1]
    f = features.reshape(-1, feat_dim).astype(jnp.float32)
    d01 = (dirs.reshape(-1, n_dir).astype(jnp.float32) + 1.0) / 2.0
    d = d01 * 2.0 - 1.0
    sh = jnp.stack(_sh4_terms_full(d[:, 0], d[:, 1], d[:, 2]), axis=-1)   # [N, 16]
    inp = jnp.concatenate([f, sh], axis=-1)
    h = jax.nn.relu(inp @ w1.T.astype(jnp.float32) + b1.astype(jnp.float32))
    h = jax.nn.relu(h @ w2.T.astype(jnp.float32) + b2.astype(jnp.float32))
    c = jax.nn.sigmoid(h @ w3.T.astype(jnp.float32) + b3.astype(jnp.float32))
    return c.reshape(*batch_shape, w3.shape[0]).astype(jnp.float32)


if __name__ == "__main__":
    key = jax.random.PRNGKey(0)
    ks = jax.random.split(key, 8)

    # Small but non-trivial: N = 2*12*17 = 408 rows -> 2 grid steps + ragged tail.
    batch, h, w = 2, 12, 17
    feat_dim, sh_dim, hidden, out_dim = 16, 16, 64, 3

    features = jax.random.normal(ks[0], (batch, h, w, feat_dim), jnp.float32)
    dirs = jax.random.normal(ks[1], (batch, h, w, 3), jnp.float32)
    dirs = dirs / jnp.linalg.norm(dirs, axis=-1, keepdims=True)

    s = 0.2
    w1 = s * jax.random.normal(ks[2], (hidden, feat_dim + sh_dim), jnp.float32)
    b1 = s * jax.random.normal(ks[3], (hidden,), jnp.float32)
    w2 = s * jax.random.normal(ks[4], (hidden, hidden), jnp.float32)
    b2 = s * jax.random.normal(ks[5], (hidden,), jnp.float32)
    w3 = s * jax.random.normal(ks[6], (out_dim, hidden), jnp.float32)
    b3 = s * jax.random.normal(ks[7], (out_dim,), jnp.float32)

    out = volume_radiance_forward(features, dirs, w1, b1, w2, b2, w3, b3)
    out = jax.block_until_ready(out)

    ref = volume_radiance_reference(features, dirs, w1, b1, w2, b2, w3, b3)
    err = float(jnp.max(jnp.abs(out - ref)))
    assert out.shape == (batch, h, w, out_dim), out.shape
    # bf16 MXU operands -> ~1e-3 expected abs error after sigmoid; allow margin.
    assert err < 1.5e-2, f"max abs error {err}"

    print("KERNEL_OK")
</pallas_src>

<mosaic_0001>
module attributes {stable_mosaic.version = 11 : i64} {
  func.func @_radiance_kernel(%arg0: i32, %arg1: memref<256x16xf32, #tpu.memory_space<vmem>>, %arg2: memref<3x256xf32, #tpu.memory_space<vmem>>, %arg3: memref<64x16xbf16, #tpu.memory_space<vmem>>, %arg4: memref<64x15xbf16, #tpu.memory_space<vmem>>, %arg5: memref<64x1xf32, #tpu.memory_space<vmem>>, %arg6: memref<64x64xbf16, #tpu.memory_space<vmem>>, %arg7: memref<64x1xf32, #tpu.memory_space<vmem>>, %arg8: memref<3x64xbf16, #tpu.memory_space<vmem>>, %arg9: memref<3x1xf32, #tpu.memory_space<vmem>>, %arg10: memref<3x256xf32, #tpu.memory_space<vmem>>, %arg11: memref<15x256xf32, #tpu.memory_space<vmem>>) attributes {dimension_semantics = [#tpu.dimension_semantics<parallel>], iteration_bounds = array<i64: 2>, scalar_prefetch = 0 : i64, scratch_operands = 1 : i64, tpu.core_type = #tpu.core_type<tc>, window_params = [{transform_indices = @transform_0, window_bounds = array<i64: 256, 16>}, {transform_indices = @transform_1, window_bounds = array<i64: 3, 256>}, {pipeline_mode = #tpu.pipeline_mode<synchronous>, transform_indices = @transform_2, window_bounds = array<i64: 64, 16>}, {pipeline_mode = #tpu.pipeline_mode<synchronous>, transform_indices = @transform_3, window_bounds = array<i64: 64, 15>}, {pipeline_mode = #tpu.pipeline_mode<synchronous>, transform_indices = @transform_4, window_bounds = array<i64: 64, 1>}, {pipeline_mode = #tpu.pipeline_mode<synchronous>, transform_indices = @transform_5, window_bounds = array<i64: 64, 64>}, {pipeline_mode = #tpu.pipeline_mode<synchronous>, transform_indices = @transform_6, window_bounds = array<i64: 64, 1>}, {pipeline_mode = #tpu.pipeline_mode<synchronous>, transform_indices = @transform_7, window_bounds = array<i64: 3, 64>}, {pipeline_mode = #tpu.pipeline_mode<synchronous>, transform_indices = @transform_8, window_bounds = array<i64: 3, 1>}, {transform_indices = @transform_9, window_bounds = array<i64: 3, 256>}]} {
    %c0 = arith.constant 0 : index
    %c0_0 = arith.constant 0 : index
    %0 = vector.load %arg2[%c0, %c0_0] : memref<3x256xf32, #tpu.memory_space<vmem>>, vector<3x256xf32>
    %cst = arith.constant 1.000000e+00 : f32
    %1 = vector.broadcast %cst : f32 to vector<3x256xf32>
    %2 = arith.addf %0, %1 : vector<3x256xf32>
    %cst_1 = arith.constant 5.000000e-01 : f32
    %3 = vector.broadcast %cst_1 : f32 to vector<3x256xf32>
    %4 = arith.mulf %2, %3 : vector<3x256xf32>
    %cst_2 = arith.constant 2.000000e+00 : f32
    %5 = vector.broadcast %cst_2 : f32 to vector<3x256xf32>
    %6 = arith.mulf %4, %5 : vector<3x256xf32>
    %cst_3 = arith.constant 1.000000e+00 : f32
    %7 = vector.broadcast %cst_3 : f32 to vector<3x256xf32>
    %8 = arith.subf %6, %7 : vector<3x256xf32>
    %9 = vector.extract_strided_slice %8 {offsets = [0, 0], sizes = [1, 256], strides = [1, 1]} : vector<3x256xf32> to vector<1x256xf32>
    %10 = vector.extract_strided_slice %8 {offsets = [1, 0], sizes = [1, 256], strides = [1, 1]} : vector<3x256xf32> to vector<1x256xf32>
    %11 = vector.extract_strided_slice %8 {offsets = [2, 0], sizes = [1, 256], strides = [1, 1]} : vector<3x256xf32> to vector<1x256xf32>
    %12 = arith.mulf %9, %9 : vector<1x256xf32>
    %13 = arith.mulf %10, %10 : vector<1x256xf32>
    %14 = arith.mulf %11, %11 : vector<1x256xf32>
    %15 = arith.mulf %9, %10 : vector<1x256xf32>
    %16 = arith.mulf %10, %11 : vector<1x256xf32>
    %17 = arith.mulf %9, %11 : vector<1x256xf32>
    %cst_4 = arith.constant -0.488602519 : f32
    %18 = vector.broadcast %cst_4 : f32 to vector<1x256xf32>
    %19 = arith.mulf %18, %10 : vector<1x256xf32>
    %cst_5 = arith.constant 0.488602519 : f32
    %20 = vector.broadcast %cst_5 : f32 to vector<1x256xf32>
    %21 = arith.mulf %20, %11 : vector<1x256xf32>
    %cst_6 = arith.constant -0.488602519 : f32
    %22 = vector.broadcast %cst_6 : f32 to vector<1x256xf32>
    %23 = arith.mulf %22, %9 : vector<1x256xf32>
    %cst_7 = arith.constant 1.09254849 : f32
    %24 = vector.broadcast %cst_7 : f32 to vector<1x256xf32>
    %25 = arith.mulf %24, %15 : vector<1x256xf32>
    %cst_8 = arith.constant -1.09254849 : f32
    %26 = vector.broadcast %cst_8 : f32 to vector<1x256xf32>
    %27 = arith.mulf %26, %16 : vector<1x256xf32>
    %cst_9 = arith.constant 0.946174681 : f32
    %28 = vector.broadcast %cst_9 : f32 to vector<1x256xf32>
    %29 = arith.mulf %28, %14 : vector<1x256xf32>
    %cst_10 = arith.constant 0.31539157 : f32
    %30 = vector.broadcast %cst_10 : f32 to vector<1x256xf32>
    %31 = arith.subf %29, %30 : vector<1x256xf32>
    %cst_11 = arith.constant -1.09254849 : f32
    %32 = vector.broadcast %cst_11 : f32 to vector<1x256xf32>
    %33 = arith.mulf %32, %17 : vector<1x256xf32>
    %34 = arith.subf %12, %13 : vector<1x256xf32>
    %cst_12 = arith.constant 0.546274245 : f32
    %35 = vector.broadcast %cst_12 : f32 to vector<1x256xf32>
    %36 = arith.mulf %35, %34 : vector<1x256xf32>
    %cst_13 = arith.constant 0.590043604 : f32
    %37 = vector.broadcast %cst_13 : f32 to vector<1x256xf32>
    %38 = arith.mulf %37, %10 : vector<1x256xf32>
    %cst_14 = arith.constant 3.000000e+00 : f32
    %39 = vector.broadcast %cst_14 : f32 to vector<1x256xf32>
    %40 = arith.mulf %39, %12 : vector<1x256xf32>
    %41 = arith.subf %13, %40 : vector<1x256xf32>
    %42 = arith.mulf %38, %41 : vector<1x256xf32>
    %cst_15 = arith.constant 2.89061141 : f32
    %43 = vector.broadcast %cst_15 : f32 to vector<1x256xf32>
    %44 = arith.mulf %43, %15 : vector<1x256xf32>
    %45 = arith.mulf %44, %11 : vector<1x256xf32>
    %cst_16 = arith.constant 0.457045794 : f32
    %46 = vector.broadcast %cst_16 : f32 to vector<1x256xf32>
    %47 = arith.mulf %46, %10 : vector<1x256xf32>
    %cst_17 = arith.constant 5.000000e+00 : f32
    %48 = vector.broadcast %cst_17 : f32 to vector<1x256xf32>
    %49 = arith.mulf %48, %14 : vector<1x256xf32>
    %cst_18 = arith.constant 1.000000e+00 : f32
    %50 = vector.broadcast %cst_18 : f32 to vector<1x256xf32>
    %51 = arith.subf %50, %49 : vector<1x256xf32>
    %52 = arith.mulf %47, %51 : vector<1x256xf32>
    %cst_19 = arith.constant 0.373176336 : f32
    %53 = vector.broadcast %cst_19 : f32 to vector<1x256xf32>
    %54 = arith.mulf %53, %11 : vector<1x256xf32>
    %cst_20 = arith.constant 5.000000e+00 : f32
    %55 = vector.broadcast %cst_20 : f32 to vector<1x256xf32>
    %56 = arith.mulf %55, %14 : vector<1x256xf32>
    %cst_21 = arith.constant 3.000000e+00 : f32
    %57 = vector.broadcast %cst_21 : f32 to vector<1x256xf32>
    %58 = arith.subf %56, %57 : vector<1x256xf32>
    %59 = arith.mulf %54, %58 : vector<1x256xf32>
    %cst_22 = arith.constant 0.457045794 : f32
    %60 = vector.broadcast %cst_22 : f32 to vector<1x256xf32>
    %61 = arith.mulf %60, %9 : vector<1x256xf32>
    %cst_23 = arith.constant 5.000000e+00 : f32
    %62 = vector.broadcast %cst_23 : f32 to vector<1x256xf32>
    %63 = arith.mulf %62, %14 : vector<1x256xf32>
    %cst_24 = arith.constant 1.000000e+00 : f32
    %64 = vector.broadcast %cst_24 : f32 to vector<1x256xf32>
    %65 = arith.subf %64, %63 : vector<1x256xf32>
    %66 = arith.mulf %61, %65 : vector<1x256xf32>
    %cst_25 = arith.constant 1.44530571 : f32
    %67 = vector.broadcast %cst_25 : f32 to vector<1x256xf32>
    %68 = arith.mulf %67, %11 : vector<1x256xf32>
    %69 = arith.subf %12, %13 : vector<1x256xf32>
    %70 = arith.mulf %68, %69 : vector<1x256xf32>
    %cst_26 = arith.constant 0.590043604 : f32
    %71 = vector.broadcast %cst_26 : f32 to vector<1x256xf32>
    %72 = arith.mulf %71, %9 : vector<1x256xf32>
    %cst_27 = arith.constant 3.000000e+00 : f32
    %73 = vector.broadcast %cst_27 : f32 to vector<1x256xf32>
    %74 = arith.mulf %73, %13 : vector<1x256xf32>
    %75 = arith.subf %74, %12 : vector<1x256xf32>
    %76 = arith.mulf %72, %75 : vector<1x256xf32>
    %c0_28 = arith.constant 0 : index
    %c0_29 = arith.constant 0 : index
    %77 = vector.load %arg11[%c0_28, %c0_29] : memref<15x256xf32, #tpu.memory_space<vmem>>, vector<1x256xf32>
    tpu.vector_store %arg11[%c0_28, %c0_29], %19 {strides = array<i32>} : memref<15x256xf32, #tpu.memory_space<vmem>>, vector<1x256xf32>,
    %c1 = arith.constant 1 : index
    %c0_30 = arith.constant 0 : index
    %78 = vector.load %arg11[%c1, %c0_30] : memref<15x256xf32, #tpu.memory_space<vmem>>, vector<1x256xf32>
    tpu.vector_store %arg11[%c1, %c0_30], %21 {strides = array<i32>} : memref<15x256xf32, #tpu.memory_space<vmem>>, vector<1x256xf32>,
    %c2 = arith.constant 2 : index
    %c0_31 = arith.constant 0 : index
    %79 = vector.load %arg11[%c2, %c0_31] : memref<15x256xf32, #tpu.memory_space<vmem>>, vector<1x256xf32>
    tpu.vector_store %arg11[%c2, %c0_31], %23 {strides = array<i32>} : memref<15x256xf32, #tpu.memory_space<vmem>>, vector<1x256xf32>,
    %c3 = arith.constant 3 : index
    %c0_32 = arith.constant 0 : index
    %80 = vector.load %arg11[%c3, %c0_32] : memref<15x256xf32, #tpu.memory_space<vmem>>, vector<1x256xf32>
    tpu.vector_store %arg11[%c3, %c0_32], %25 {strides = array<i32>} : memref<15x256xf32, #tpu.memory_space<vmem>>, vector<1x256xf32>,
    %c4 = arith.constant 4 : index
    %c0_33 = arith.constant 0 : index
    %81 = vector.load %arg11[%c4, %c0_33] : memref<15x256xf32, #tpu.memory_space<vmem>>, vector<1x256xf32>
    tpu.vector_store %arg11[%c4, %c0_33], %27 {strides = array<i32>} : memref<15x256xf32, #tpu.memory_space<vmem>>, vector<1x256xf32>,
    %c5 = arith.constant 5 : index
    %c0_34 = arith.constant 0 : index
    %82 = vector.load %arg11[%c5, %c0_34] : memref<15x256xf32, #tpu.memory_space<vmem>>, vector<1x256xf32>
    tpu.vector_store %arg11[%c5, %c0_34], %31 {strides = array<i32>} : memref<15x256xf32, #tpu.memory_space<vmem>>, vector<1x256xf32>,
    %c6 = arith.constant 6 : index
    %c0_35 = arith.constant 0 : index
    %83 = vector.load %arg11[%c6, %c0_35] : memref<15x256xf32, #tpu.memory_space<vmem>>, vector<1x256xf32>
    tpu.vector_store %arg11[%c6, %c0_35], %33 {strides = array<i32>} : memref<15x256xf32, #tpu.memory_space<vmem>>, vector<1x256xf32>,
    %c7 = arith.constant 7 : index
    %c0_36 = arith.constant 0 : index
    %84 = vector.load %arg11[%c7, %c0_36] : memref<15x256xf32, #tpu.memory_space<vmem>>, vector<1x256xf32>
    tpu.vector_store %arg11[%c7, %c0_36], %36 {strides = array<i32>} : memref<15x256xf32, #tpu.memory_space<vmem>>, vector<1x256xf32>,
    %c8 = arith.constant 8 : index
    %c0_37 = arith.constant 0 : index
    %85 = vector.load %arg11[%c8, %c0_37] : memref<15x256xf32, #tpu.memory_space<vmem>>, vector<1x256xf32>
    tpu.vector_store %arg11[%c8, %c0_37], %42 {strides = array<i32>} : memref<15x256xf32, #tpu.memory_space<vmem>>, vector<1x256xf32>,
    %c9 = arith.constant 9 : index
    %c0_38 = arith.constant 0 : index
    %86 = vector.load %arg11[%c9, %c0_38] : memref<15x256xf32, #tpu.memory_space<vmem>>, vector<1x256xf32>
    tpu.vector_store %arg11[%c9, %c0_38], %45 {strides = array<i32>} : memref<15x256xf32, #tpu.memory_space<vmem>>, vector<1x256xf32>,
    %c10 = arith.constant 10 : index
    %c0_39 = arith.constant 0 : index
    %87 = vector.load %arg11[%c10, %c0_39] : memref<15x256xf32, #tpu.memory_space<vmem>>, vector<1x256xf32>
    tpu.vector_store %arg11[%c10, %c0_39], %52 {strides = array<i32>} : memref<15x256xf32, #tpu.memory_space<vmem>>, vector<1x256xf32>,
    %c11 = arith.constant 11 : index
    %c0_40 = arith.constant 0 : index
    %88 = vector.load %arg11[%c11, %c0_40] : memref<15x256xf32, #tpu.memory_space<vmem>>, vector<1x256xf32>
    tpu.vector_store %arg11[%c11, %c0_40], %59 {strides = array<i32>} : memref<15x256xf32, #tpu.memory_space<vmem>>, vector<1x256xf32>,
    %c12 = arith.constant 12 : index
    %c0_41 = arith.constant 0 : index
    %89 = vector.load %arg11[%c12, %c0_41] : memref<15x256xf32, #tpu.memory_space<vmem>>, vector<1x256xf32>
    tpu.vector_store %arg11[%c12, %c0_41], %66 {strides = array<i32>} : memref<15x256xf32, #tpu.memory_space<vmem>>, vector<1x256xf32>,
    %c13 = arith.constant 13 : index
    %c0_42 = arith.constant 0 : index
    %90 = vector.load %arg11[%c13, %c0_42] : memref<15x256xf32, #tpu.memory_space<vmem>>, vector<1x256xf32>
    tpu.vector_store %arg11[%c13, %c0_42], %70 {strides = array<i32>} : memref<15x256xf32, #tpu.memory_space<vmem>>, vector<1x256xf32>,
    %c14 = arith.constant 14 : index
    %c0_43 = arith.constant 0 : index
    %91 = vector.load %arg11[%c14, %c0_43] : memref<15x256xf32, #tpu.memory_space<vmem>>, vector<1x256xf32>
    tpu.vector_store %arg11[%c14, %c0_43], %76 {strides = array<i32>} : memref<15x256xf32, #tpu.memory_space<vmem>>, vector<1x256xf32>,
    %c0_44 = arith.constant 0 : index
    %c0_45 = arith.constant 0 : index
    %92 = vector.load %arg11[%c0_44, %c0_45] : memref<15x256xf32, #tpu.memory_space<vmem>>, vector<15x256xf32>
    %93 = arith.truncf %92 : vector<15x256xf32> to vector<15x256xbf16>
    %c0_46 = arith.constant 0 : index
    %c0_47 = arith.constant 0 : index
    %94 = vector.load %arg1[%c0_46, %c0_47] : memref<256x16xf32, #tpu.memory_space<vmem>>, vector<256x16xf32>
    %95 = arith.truncf %94 : vector<256x16xf32> to vector<256x16xbf16>
    %c0_48 = arith.constant 0 : index
    %c0_49 = arith.constant 0 : index
    %96 = vector.load %arg3[%c0_48, %c0_49] : memref<64x16xbf16, #tpu.memory_space<vmem>>, vector<64x16xbf16>
    %cst_50 = arith.constant dense<0.000000e+00> : vector<64x256xf32>
    %97 = tpu.matmul %96, %95, %cst_50 {dimension_numbers = #tpu.dot_dimension_numbers<[1], [1], [0], [0], [0, 0, 1, 0], [], []>} : vector<64x16xbf16>, vector<256x16xbf16>, vector<64x256xf32> -> vector<64x256xf32>
    %c0_51 = arith.constant 0 : index
    %c0_52 = arith.constant 0 : index
    %98 = vector.load %arg4[%c0_51, %c0_52] : memref<64x15xbf16, #tpu.memory_space<vmem>>, vector<64x15xbf16>
    %cst_53 = arith.constant dense<0.000000e+00> : vector<64x256xf32>
    %99 = tpu.matmul %98, %93, %cst_53 {dimension_numbers = #tpu.dot_dimension_numbers<[1], [0], [0], [1], [0, 0, 1, 1], [], []>} : vector<64x15xbf16>, vector<15x256xbf16>, vector<64x256xf32> -> vector<64x256xf32>
    %100 = arith.addf %97, %99 : vector<64x256xf32>
    %c0_54 = arith.constant 0 : index
    %c0_55 = arith.constant 0 : index
    %101 = vector.load %arg5[%c0_54, %c0_55] : memref<64x1xf32, #tpu.memory_space<vmem>>, vector<64x1xf32>
    %102 = vector.broadcast %101 : vector<64x1xf32> to vector<64x256xf32>
    %103 = arith.addf %100, %102 : vector<64x256xf32>
    %cst_56 = arith.constant 0.000000e+00 : f32
    %104 = vector.broadcast %cst_56 : f32 to vector<64x256xf32>
    %105 = arith.maximumf %103, %104 : vector<64x256xf32>
    %106 = arith.truncf %105 : vector<64x256xf32> to vector<64x256xbf16>
    %c0_57 = arith.constant 0 : index
    %c0_58 = arith.constant 0 : index
    %107 = vector.load %arg6[%c0_57, %c0_58] : memref<64x64xbf16, #tpu.memory_space<vmem>>, vector<64x64xbf16>
    %cst_59 = arith.constant dense<0.000000e+00> : vector<64x256xf32>
    %108 = tpu.matmul %107, %106, %cst_59 {dimension_numbers = #tpu.dot_dimension_numbers<[1], [0], [0], [1], [0, 0, 1, 1], [], []>} : vector<64x64xbf16>, vector<64x256xbf16>, vector<64x256xf32> -> vector<64x256xf32>
    %c0_60 = arith.constant 0 : index
    %c0_61 = arith.constant 0 : index
    %109 = vector.load %arg7[%c0_60, %c0_61] : memref<64x1xf32, #tpu.memory_space<vmem>>, vector<64x1xf32>
    %110 = vector.broadcast %109 : vector<64x1xf32> to vector<64x256xf32>
    %111 = arith.addf %108, %110 : vector<64x256xf32>
    %cst_62 = arith.constant 0.000000e+00 : f32
    %112 = vector.broadcast %cst_62 : f32 to vector<64x256xf32>
    %113 = arith.maximumf %111, %112 : vector<64x256xf32>
    %114 = arith.truncf %113 : vector<64x256xf32> to vector<64x256xbf16>
    %c0_63 = arith.constant 0 : index
    %c0_64 = arith.constant 0 : index
    %115 = vector.load %arg8[%c0_63, %c0_64] : memref<3x64xbf16, #tpu.memory_space<vmem>>, vector<3x64xbf16>
    %cst_65 = arith.constant dense<0.000000e+00> : vector<3x256xf32>
    %116 = tpu.matmul %115, %114, %cst_65 {dimension_numbers = #tpu.dot_dimension_numbers<[1], [0], [0], [1], [0, 0, 1, 1], [], []>} : vector<3x64xbf16>, vector<64x256xbf16>, vector<3x256xf32> -> vector<3x256xf32>
    %c0_66 = arith.constant 0 : index
    %c0_67 = arith.constant 0 : index
    %117 = vector.load %arg9[%c0_66, %c0_67] : memref<3x1xf32, #tpu.memory_space<vmem>>, vector<3x1xf32>
    %118 = vector.broadcast %117 : vector<3x1xf32> to vector<3x256xf32>
    %119 = arith.addf %116, %118 : vector<3x256xf32>
    %120 = arith.negf %119 : vector<3x256xf32>
    %121 = math.exp %120 : vector<3x256xf32>
    %cst_68 = arith.constant 1.000000e+00 : f32
    %122 = vector.broadcast %cst_68 : f32 to vector<3x256xf32>
    %123 = arith.addf %122, %121 : vector<3x256xf32>
    %124 = arith.divf %122, %123 : vector<3x256xf32>
    %c0_69 = arith.constant 0 : index
    %c0_70 = arith.constant 0 : index
    %125 = vector.load %arg10[%c0_69, %c0_70] : memref<3x256xf32, #tpu.memory_space<vmem>>, vector<3x256xf32>
    tpu.vector_store %arg10[%c0_69, %c0_70], %124 {strides = array<i32>} : memref<3x256xf32, #tpu.memory_space<vmem>>, vector<3x256xf32>,
    return
  }
  func.func @transform_0(%arg0: i32) -> (i32, i32) {
    %c0_i32 = arith.constant 0 : i32
    %c0_i32_0 = arith.constant 0 : i32
    return %arg0, %c0_i32 : i32, i32
  }
  func.func @transform_1(%arg0: i32) -> (i32, i32) {
    %c0_i32 = arith.constant 0 : i32
    %c0_i32_0 = arith.constant 0 : i32
    return %c0_i32, %arg0 : i32, i32
  }
  func.func @transform_2(%arg0: i32) -> (i32, i32) {
    %c0_i32 = arith.constant 0 : i32
    %c0_i32_0 = arith.constant 0 : i32
    %c0_i32_1 = arith.constant 0 : i32
    return %c0_i32, %c0_i32_0 : i32, i32
  }
  func.func @transform_3(%arg0: i32) -> (i32, i32) {
    %c0_i32 = arith.constant 0 : i32
    %c0_i32_0 = arith.constant 0 : i32
    %c0_i32_1 = arith.constant 0 : i32
    return %c0_i32, %c0_i32_0 : i32, i32
  }
  func.func @transform_4(%arg0: i32) -> (i32, i32) {
    %c0_i32 = arith.constant 0 : i32
    %c0_i32_0 = arith.constant 0 : i32
    %c0_i32_1 = arith.constant 0 : i32
    return %c0_i32, %c0_i32_0 : i32, i32
  }
  func.func @transform_5(%arg0: i32) -> (i32, i32) {
    %c0_i32 = arith.constant 0 : i32
    %c0_i32_0 = arith.constant 0 : i32
    %c0_i32_1 = arith.constant 0 : i32
    return %c0_i32, %c0_i32_0 : i32, i32
  }
  func.func @transform_6(%arg0: i32) -> (i32, i32) {
    %c0_i32 = arith.constant 0 : i32
    %c0_i32_0 = arith.constant 0 : i32
    %c0_i32_1 = arith.constant 0 : i32
    return %c0_i32, %c0_i32_0 : i32, i32
  }
  func.func @transform_7(%arg0: i32) -> (i32, i32) {
    %c0_i32 = arith.constant 0 : i32
    %c0_i32_0 = arith.constant 0 : i32
    %c0_i32_1 = arith.constant 0 : i32
    return %c0_i32, %c0_i32_0 : i32, i32
  }
  func.func @transform_8(%arg0: i32) -> (i32, i32) {
    %c0_i32 = arith.constant 0 : i32
    %c0_i32_0 = arith.constant 0 : i32
    %c0_i32_1 = arith.constant 0 : i32
    return %c0_i32, %c0_i32_0 : i32, i32
  }
  func.func @transform_9(%arg0: i32) -> (i32, i32) {
    %c0_i32 = arith.constant 0 : i32
    %c0_i32_0 = arith.constant 0 : i32
    return %c0_i32, %arg0 : i32, i32
  }
}

</mosaic_0001>

<bundles_post_ra>
// kernel: volume_radiance_forward.1
= control target key start
LH: loop header
LB: loop body
LE: loop exit
PB: predicated region body
PF: predicated region fallthrough
CT: control target
= control target key end

     0   :  { %s1672_s30 = smov 0   ;;  %s1958_s0 = inlined_call_operand.vmem [shape: f32[408,16], index: 0, kind: input, shape index: {}]   ;;  %s1959_s1 = inlined_call_operand.vmem [shape: f32[3,408], index: 1, kind: input, shape index: {}]   ;;  %s1960_s2 = inlined_call_operand.vmem [shape: bf16[64,16], index: 2, kind: input, shape index: {}]   ;;  %s1961_s3 = inlined_call_operand.vmem [shape: bf16[64,15], index: 3, kind: input, shape index: {}]   ;;  %s1962_s4 = inlined_call_operand.vmem [shape: f32[64,1], index: 4, kind: input, shape index: {}]   ;;  %s1963_s5 = inlined_call_operand.vmem [shape: bf16[64,64], index: 5, kind: input, shape index: {}]   ;;  %s1964_s6 = inlined_call_operand.vmem [shape: f32[64,1], index: 6, kind: input, shape index: {}]   ;;  %s1965_s7 = inlined_call_operand.vmem [shape: bf16[3,64], index: 7, kind: input, shape index: {}]   ;;  %s1966_s8 = inlined_call_operand.vmem [shape: f32[3,1], index: 8, kind: input, shape index: {}]   ;;  %s1967_s9 = inlined_call_operand.vmem [shape: f32[3,408], index: 9, kind: output, shape index: {}]  }
   0x1 LB: > { %s1482_s10 = sadd.s32 4294967295, %s1617_s30   ;;  %p1486_p0 = scmp.ge.s32.totalorder %s1617_s30, 1  ;;  %s1617_s30 = sphi %s1672_s30, %s19_s30  }
   0x2   : > { %p307_p1 = scmp.lt.s32.totalorder %s1617_s30, 3 }
   0x4   : > { %p308_p2 = pnand %p1486_p0, %p307_p1 }
   0x5   : > { %s1487_s11 = sshll.u32 (!%p308_p2), %s1482_s10, 5  ;;  %s1489_s12 = sshll.u32 (!%p308_p2), %s1482_s10, 1  ;;  %v1619_v0 = vmov (!%p308_p2), 0   ;;  %v1686_v1 = vld [vmem:[%s1960_s2] sm:$0xff] (!%p308_p2)   ;;  %vm938_vm0 = vcmask (!%p308_p2), 130048   ;;  %v448_v22 = vlaneseq (!%p308_p2)  ;;  %v1074_v42 = vld [vmem:[%s1962_s4 + $0x10] sm:$0xff] (!%p308_p2) }
   0x6   : > { %311 = sbr.rel (%p308_p2) target bundleno = 828 (0x33c), region = 56  ;;  %p357_p3 = scmp.lt.s32.totalorder (!%p308_p2), %s1487_s11, 50  ;;  %877 = vmatprep.mubr.bf16.mxu1 (!%p308_p2), %v1619_v0  ;;  %1589 = vset.pattern.permute.xlu0 (!%p308_p2), %v1619_v0  ;;  %v1620_v20 = vmov (!%p308_p2), 1966171168   ;;  %v1072_v38 = vld [vmem:[%s1962_s4] sm:$0xff] (!%p308_p2)  ;;  %v1073_v43 = vld [vmem:[%s1962_s4 + $0x8] sm:$0xff] (!%p308_p2) }
   0x7   : > { %p367_p4 = scmp.lt.s32.totalorder (!%p308_p2), %s1489_s12, 3  ;;  %1590 = vset.pattern.permute.xlu1 (!%p308_p2), %v1619_v0  ;;  %1546 = vmatprep.mubr.msk.bf16.mxu0 (!%p308_p2), %vm938_vm0, %v1686_v1  ;;  %v446_v21 = vunpack.c.l.s4 (!%p308_p2), %v1620_v20  ;;  %v449_v34 = vshrl.u32 (!%p308_p2), %v448_v22, 7  ;;  %v1075_v49 = vld [vmem:[%s1962_s4 + $0x18] sm:$0xff] (!%p308_p2)  ;;  %vm1760_vm1 = vcmp.lt.s32.totalorder (!%p308_p2), %v448_v22, 256  ;;  %v1076_v59 = vld [vmem:[%s1962_s4 + $0x20] sm:$0xff] (!%p308_p2)  ;;  %vm835_vm2 = vcmask (!%p308_p2), 1046528  }
   0x8   : > { %1082 = vperm.xlu0 (!%p308_p2), %1589, %v1072_v38   ;;  %1092 = vperm.xlu1 (!%p308_p2), %1590, %v1074_v42   ;;  %v1079_v20 = vld [vmem:[%s1962_s4 + $0x38] sm:$0xff] (!%p308_p2)  ;;  %v1169_v42 = vld [vmem:[%s1964_s6 + $0x8] sm:$0xff] (!%p308_p2)  ;;  %vm836_vm3 = vcmask (!%p308_p2), 1047552   ;;  %v1621_v58 = vmov (!%p308_p2), 65535   ;;  %vm822_vm4 = vcmask (!%p308_p2), 121856   ;;  %vm1236_vm5 = vcmask (!%p308_p2), 523264  }
   0x9   : > { %v447_v33 = vunpack.c.0.s8 (!%p308_p2), %v446_v21 }
   0xb   : > { %v1748_v48 = vsub.s32 (!%p308_p2), %v447_v33, %v449_v34 }
   0xc   : > { %1087 = vperm.xlu0 (!%p308_p2), %1589, %v1073_v43   ;;  %1097 = vperm.xlu1 (!%p308_p2), %1590, %v1075_v49  }
   0xd   : > { %s1971_s11 = smov (!%p357_p3, %s1487_s11), 50  ;;  %s1973_s12 = smov (!%p367_p4, %s1489_s12), 3 }
   0xe   : > { %s1488_s15 = sshll.u32 %s1971_s11, 3  ;;  %s1490_s19 = sshll.u32 %s1973_s12, 2 }
   0xf   : > { %s1691_s18 = scalar_lea.vmem %s1958_s0, %s1488_s15  ;;  %s370_s22 = scalar_lea.vmem %s1959_s1, %s1490_s19 }
  0x10   : > { %v754_v2 = vld [vmem:[%s1691_s18 + $0x80] sm:$0xff]  ;;  %v755_v3 = vld [vmem:[%s1691_s18 + $0x88] sm:$0xff]  ;;  %v756_v7 = vld [vmem:[%s1691_s18 + $0x90] sm:$0xff]  ;;  %1102 = vperm.xlu0 %1589, %v1076_v59   ;;  %s376_s10 = scalar_lea.vmem %s1967_s9, %s1490_s19 }
  0x11   : > { %v738_v4 = vld [vmem:[%s1691_s18] sm:$0xff]  ;;  %v778_v5 = vpack.c.bf16 %v755_v3, %v754_v2  ;;  %v739_v6 = vld [vmem:[%s1691_s18 + $0x8] sm:$0xff]  ;;  %v757_v8 = vld [vmem:[%s1691_s18 + $0x98] sm:$0xff] }
  0x12   : > { %v770_v9 = vpack.c.bf16 %v739_v6, %v738_v4  ;;  %v779_v10 = vpack.c.bf16 %v757_v8, %v756_v7  ;;  %v740_v11 = vld [vmem:[%s1691_s18 + $0x10] sm:$0xff]  ;;  %v741_v12 = vld [vmem:[%s1691_s18 + $0x18] sm:$0xff]  ;;  %v758_v15 = vld [vmem:[%s1691_s18 + $0xa0] sm:$0xff] }
  0x13   : > { %1570 = vmatprep.subr.msk.bf16.mxu0 %vm938_vm0, %v778_v5  ;;  %v771_v14 = vpack.c.bf16 %v741_v12, %v740_v11  ;;  %v759_v16 = vld [vmem:[%s1691_s18 + $0xa8] sm:$0xff]  ;;  %v742_v17 = vld [vmem:[%s1691_s18 + $0x20] sm:$0xff]  ;;  %v744_v19 = vld [vmem:[%s1691_s18 + $0x30] sm:$0xff] }
  0x14   : > { %v952_v13 = vsel %vm938_vm0, %v770_v9, 0  ;;  %v743_v18 = vld [vmem:[%s1691_s18 + $0x28] sm:$0xff]  ;;  %v780_v24 = vpack.c.bf16 %v759_v16, %v758_v15  ;;  %v745_v25 = vld [vmem:[%s1691_s18 + $0x38] sm:$0xff]  ;;  %v746_v26 = vld [vmem:[%s1691_s18 + $0x40] sm:$0xff] }
  0x15   : > { %1531 = vmatpush3.bf16.xpose.msra.mxu0 %v952_v13  ;;  %v955_v23 = vsel %vm938_vm0, %v771_v14, 0  ;;  %v379_v27 = vld [vmem:[%s370_s22] sm:$0x77]  ;;  %v747_v28 = vld [vmem:[%s1691_s18 + $0x48] sm:$0xff]  ;;  %v760_v30 = vld [vmem:[%s1691_s18 + $0xb0] sm:$0xff]  ;;  %v772_v35 = vpack.c.bf16 %v743_v18, %v742_v17  ;;  %v773_v36 = vpack.c.bf16 %v745_v25, %v744_v19 }
  0x16   : > { %1571 = vmatprep.subr.msk.bf16.mxu0 %vm938_vm0, %v779_v10  ;;  %v380_v29 = vadd.f32 1.0, %v379_v27  ;;  %v761_v31 = vld [vmem:[%s1691_s18 + $0xb8] sm:$0xff]  ;;  %v774_v37 = vpack.c.bf16 %v747_v28, %v746_v26  ;;  %v1731_v39 = vld [vmem:[%s1691_s18 + $0xc0] sm:$0xff]  ;;  %v1734_v40 = vld [vmem:[%s1691_s18 + $0xc8] sm:$0xff] }
  0x17   : > { %v781_v44 = vpack.c.bf16 %v761_v31, %v760_v30  ;;  %v1743_v45 = vld [vmem:[%s1691_s18 + $0xd0] sm:$0xff]  ;;  %v1746_v46 = vld [vmem:[%s1691_s18 + $0xd8] sm:$0xff]  ;;  %v958_v50 = vsel %vm938_vm0, %v772_v35, 0  ;;  %v961_v51 = vsel %vm938_vm0, %v773_v36, 0  ;;  %v782_v52 = vpack.c.bf16 %v1734_v40, %v1731_v39  ;;  %v1077_v6 = vld [vmem:[%s1962_s4 + $0x28] sm:$0xff] }
  0x18   : > { %v381_v32 = vmul.f32 0.5, %v380_v29  ;;  %v1758_v53 = vsel %vm938_vm0, %v774_v37, 0  ;;  %v783_v60 = vpack.c.bf16 %v1746_v46, %v1743_v45  ;;  %v1078_v19 = vld [vmem:[%s1962_s4 + $0x30] sm:$0xff]  ;;  %1107 = vperm.xlu1 %1590, %v1077_v6   ;;  %v1168_v29 = vld [vmem:[%s1964_s6] sm:$0xff]  ;;  %v1175_v46 = vld [vmem:[%s1964_s6 + $0x38] sm:$0xff] }
  0x19   : > { %1112 = vperm.xlu0 %1589, %v1078_v19   ;;  %v1174_v45 = vld [vmem:[%s1964_s6 + $0x30] sm:$0xff] }
  0x1a   : > { %v382_v41 = vmul.f32 2.0, %v381_v32 }
  0x1c   : > { %v1493_v47 = vadd.f32 -1.0, %v382_v41  ;;  %1117 = vperm.xlu1 %1590, %v1079_v20  }
  0x1d   : > { %1533 = vmatpush3.bf16.xpose.msra.mxu0 %v955_v23  ;;  %1178 = vperm.xlu0 %1589, %v1168_v29   ;;  %v750_v29 = vld [vmem:[%s1691_s18 + $0x60] sm:$0xff] }
  0x1e   : > { %1572 = vmatprep.subr.msk.bf16.mxu0 %vm938_vm0, %v780_v24  ;;  %v384_v54 = vmul.f32 %v1493_v47, %v1493_v47  ;;  %v1494_v55 = vrot.slane %v1493_v47, 9  ;;  %v390_v56 = vrot.slane %v1493_v47, 6  ;;  %v394_v57 = vmul.f32 -0.48860252, %v1493_v47 }
  0x1f   : > { %v395_v61 = vmul.f32 0.48860252, %v1493_v47  ;;  %v407_v62 = vmul.f32 0.5900436, %v1493_v47  ;;  %v416_v63 = vmul.f32 0.4570458, %v1493_v47 }
  0x20   : > { %v389_v2 = vmul.f32 %v1494_v55, %v1493_v47  ;;  %v391_v3 = vrot.slane %v390_v56, 4  ;;  %v398_v4 = vmul.f32 0.9461747, %v384_v54  ;;  %v1496_v5 = vrot.slane %v384_v54, 9  ;;  %1183 = vperm.xlu1 %1590, %v1169_v42  }
  0x21   : > { %v408_v7 = vmul.f32 3.0, %v384_v54  ;;  %v417_v8 = vmul.f32 5.0, %v384_v54  ;;  %v424_v9 = vmul.f32 0.37317634, %v1493_v47  ;;  %v431_v10 = vmul.f32 1.4453057, %v1493_v47 }
  0x22   : > { %v393_v11 = vmul.f32 %v1493_v47, %v391_v3  ;;  %v396_v12 = vmul.f32 1.0925485, %v389_v2  ;;  %v397_v13 = vmul.f32 -1.0925485, %v389_v2  ;;  %v1495_v14 = vadd.f32 -0.31539157, %v398_v4 }
  0x23   : > { %v405_v15 = vsub.f32 %v384_v54, %v1496_v5  ;;  %v410_v16 = vrot.slane %v408_v7, 7  ;;  %v414_v17 = vmul.f32 2.8906114, %v389_v2  ;;  %v418_v18 = vsub.f32 1.0, %v417_v8  ;;  %v1171_v4 = vld [vmem:[%s1964_s6 + $0x18] sm:$0xff] }
  0x24   : > { %v400_v21 = vmul.f32 -1.0925485, %v393_v11  ;;  %v1498_v22 = vadd.f32 -3.0, %v417_v8  ;;  %v436_v23 = vrot.slane %v384_v54, 7  ;;  %v451_v24 = vrot.slane %v394_v57, %v1748_v48  ;;  %1193 = vperm.xlu1 %1590, %v1171_v4  }
  0x25   : > { %1535 = vmatpush3.bf16.xpose.msra.mxu0 %v958_v50  ;;  %v406_v25 = vmul.f32 0.54627424, %v405_v15  ;;  %v412_v26 = vsub.f32 %v384_v54, %v410_v16  ;;  %v415_v27 = vmul.f32 %v414_v17, %v391_v3  ;;  %v1497_v28 = vrot.slane %v418_v18, 9 }
  0x26   : > { %1573 = vmatprep.subr.msk.bf16.mxu0 %vm938_vm0, %v781_v44  ;;  %v1783_v30 = vmul.f32 %v1498_v22, %v424_v9  ;;  %v1499_v31 = vrot.slane %v418_v18, 10  ;;  %v433_v32 = vrot.slane %v405_v15, 6  ;;  %v438_v33 = vsub.f32 %v408_v7, %v436_v23  ;;  %v748_v9 = vld [vmem:[%s1691_s18 + $0x50] sm:$0xff]  ;;  %v1172_v18 = vld [vmem:[%s1964_s6 + $0x20] sm:$0xff]  ;;  %v1173_v22 = vld [vmem:[%s1964_s6 + $0x28] sm:$0xff] }
  0x27   : > { %v413_v34 = vmul.f32 %v412_v26, %v407_v62  ;;  %v423_v35 = vmul.f32 %v1497_v28, %v416_v63  ;;  %v452_v36 = vcombine.high %v451_v24, %v451_v24  ;;  %v459_v37 = vrot.slane %v451_v24, %v1748_v48  ;;  %v767_v26 = vld [vmem:[%s1691_s18 + $0xe8] sm:$0xff] }
  0x28   : > { %v430_v38 = vmul.f32 %v1499_v31, %v416_v63  ;;  %v435_v39 = vmul.f32 %v433_v32, %v431_v10  ;;  %v1500_v40 = vrot.slane %v438_v33, 9  ;;  %v481_v41 = vrot.slane %v395_v61, %v1748_v48  ;;  %v1170_v61 = vld [vmem:[%s1964_s6 + $0x10] sm:$0xff]  ;;  %v749_v10 = vld [vmem:[%s1691_s18 + $0x58] sm:$0xff]  ;;  %1203 = vperm.xlu1 %1590, %v1173_v22   ;;  %v1347_v31 = vld [vmem:[%s1966_s8] sm:$0x7] }
  0x29   : > { %v466_v43 = vrot.slane %v452_v36, %v1748_v48  ;;  %496 = vst.msk [vmem:[#allocation2 + $0x2] ss:$8 sm:$0x3] %vm1760_vm1, %v459_v37  ;;  %v505_v44 = vrot.slane %v396_v12, %v1748_v48  ;;  %v524_v47 = vrot.slane %v397_v13, %v1748_v48  ;;  %v544_v49 = vrot.slane %v1495_v14, %v1748_v48  ;;  %v768_v36 = vld [vmem:[%s1691_s18 + $0xf0] sm:$0xff]  ;;  %v769_v37 = vld [vmem:[%s1691_s18 + $0xf8] sm:$0xff] }
  0x2a   : > { %v443_v50 = vmul.f32 %v1500_v40, %v407_v62  ;;  %v564_v54 = vrot.slane %v400_v21, %v1748_v48  ;;  %v583_v55 = vrot.slane %v406_v25, %v1748_v48  ;;  %v602_v59 = vrot.slane %v413_v34, %v1748_v48  ;;  %1188 = vperm.xlu0 %1589, %v1170_v61   ;;  %v766_v25 = vld [vmem:[%s1691_s18 + $0xe0] sm:$0xff]  ;;  %v1596_v61 = vld [vmem:[%s1960_s2 + $0x10] sm:$0xff]  }
  0x2b   : > { %472 = vst.msk [vmem:[#allocation2] ss:$8 sm:$0x3] %vm1760_vm1, %v466_v43  ;;  %v525_v56 = vcombine.high %v524_v47, %v524_v47  ;;  %v551_v57 = vrot.slane %v544_v49, %v1748_v48  ;;  %v622_v3 = vrot.slane %v415_v27, %v1748_v48  ;;  %v641_v8 = vrot.slane %v423_v35, %v1748_v48  ;;  %v752_v49 = vld [vmem:[%s1691_s18 + $0x70] sm:$0xff] }
  0x2c   : > { %v571_v63 = vrot.slane %v564_v54, %v1748_v48  ;;  %v590_v2 = vrot.slane %v583_v55, %v1748_v48  ;;  %v603_v7 = vcombine.high %v602_v59, %v602_v59  ;;  %v661_v12 = vrot.slane %v1783_v30, %v1748_v48  ;;  %v751_v30 = vld [vmem:[%s1691_s18 + $0x68] sm:$0xff]  ;;  %1213 = vperm.xlu1 %1590, %v1175_v46   ;;  %v1591_v54 = vld [vmem:[%s1961_s3] sm:$0xff]   ;;  %v1595_v59 = vld [vmem:[%s1961_s3 + $0x10] sm:$0xff]  }
  0x2d   : > { %1537 = vmatpush3.bf16.xpose.msra.mxu0 %v961_v51  ;;  %v488_v51 = vrot.slane %v481_v41, %v1748_v48  ;;  %v532_v5 = vrot.slane %v525_v56, %v1748_v48  ;;  %v552_v6 = vcombine.high %v551_v57, %v551_v57  ;;  %v629_v11 = vrot.slane %v622_v3, %v1748_v48  ;;  %v1593_v56 = vld [vmem:[%s1961_s3 + $0x8] sm:$0xff]  }
  0x2e   : > { %1574 = vmatprep.subr.msk.bf16.mxu0 %vm938_vm0, %v782_v52  ;;  %v512_v52 = vrot.slane %v505_v44, %v1748_v48  ;;  %574 = vst.msk [vmem:[#allocation2 + $0x6] ss:$8 sm:$0x3] %vm1760_vm1, %v571_v63  ;;  %593 = vst.msk [vmem:[#allocation2 + $0x7] ss:$8 sm:$0x3] %vm1760_vm1, %v590_v2  ;;  %v681_v13 = vrot.slane %v430_v38, %v1748_v48  ;;  %v700_v14 = vrot.slane %v435_v39, %v1748_v48 }
  0x2f   : > { %v489_v62 = vcombine.high %v488_v51, %v488_v51  ;;  %535 = vst.msk [vmem:[#allocation2 + $0x4] ss:$8 sm:$0x3] %vm1760_vm1, %v532_v5  ;;  %555 = vst.msk [vmem:[#allocation2 + $0x5] ss:$8 sm:$0x3] %vm1760_vm1, %v552_v6  ;;  %v610_v15 = vrot.slane %v603_v7, %v1748_v48  ;;  %v642_v16 = vcombine.high %v641_v8, %v641_v8  ;;  %1198 = vperm.xlu0 %1589, %v1172_v18  }
  0x30   : > { %515 = vst.msk [vmem:[#allocation2 + $0x3] ss:$8 sm:$0x3] %vm1760_vm1, %v512_v52  ;;  %v720_v17 = vrot.slane %v443_v50, %v1748_v48  ;;  %632 = vst.msk [vmem:[#allocation2 + $0x11] ss:$8 sm:$0x3] %vm1760_vm1, %v629_v11  ;;  %v668_v19 = vrot.slane %v661_v12, %v1748_v48  ;;  %v688_v20 = vrot.slane %v681_v13, %v1748_v48 }
  0x31   : > { %492 = vst.msk [vmem:[#allocation2 + $0x1] ss:$8 sm:$0x3] %vm1760_vm1, %v489_v62  ;;  %v707_v21 = vrot.slane %v700_v14, %v1748_v48  ;;  %v775_v23 = vpack.c.bf16 %v749_v10, %v748_v9  ;;  %613 = vst.msk [vmem:[#allocation2 + $0x10] ss:$8 sm:$0x3] %vm1760_vm1, %v610_v15  ;;  %v776_v33 = vpack.c.bf16 %v751_v30, %v750_v29 }
  0x32   : > { %v727_v24 = vrot.slane %v720_v17, %v1748_v48  ;;  %v669_v27 = vcombine.high %v668_v19, %v668_v19  ;;  %691 = vst.msk [vmem:[#allocation2 + $0x14] ss:$8 sm:$0x3] %vm1760_vm1, %v688_v20  ;;  %v837_v32 = vsel %vm835_vm2, 4294967295, %v1621_v58  ;;  %v785_v44 = vpack.c.bf16 %v769_v37, %v768_v36  ;;  %v753_v50 = vld [vmem:[%s1691_s18 + $0x78] sm:$0xff]  ;;  %v1594_v57 = vld [vmem:[%s1960_s2 + $0x8] sm:$0xff]  }
  0x33   : > { %v708_v28 = vcombine.high %v707_v21, %v707_v21  ;;  %1208 = vperm.xlu0 %1589, %v1174_v45   ;;  %v838_v39 = vsel %vm836_vm3, %v837_v32, 0  ;;  %v970_v43 = vsel %vm938_vm0, %v776_v33, 0  ;;  %v777_v55 = vpack.c.bf16 %v753_v50, %v752_v49  ;;  %v1598_v62 = vld [vmem:[%s1960_s2 + $0x18] sm:$0xff]  }
  0x34   : > { %730 = vst.msk [vmem:[#allocation2 + $0x16] ss:$8 sm:$0x3] %vm1760_vm1, %v727_v24  ;;  %672 = vst.msk [vmem:[#allocation2 + $0x13] ss:$8 sm:$0x3] %vm1760_vm1, %v669_v27 }
  0x35   : > { %1539 = vmatpush3.bf16.xpose.msra.mxu0 %v1758_v53  ;;  %v649_v53 = vrot.slane %v642_v16, %v1748_v48  ;;  %711 = vst.msk [vmem:[#allocation2 + $0x15] ss:$8 sm:$0x3] %vm1760_vm1, %v708_v28  ;;  %v967_v48 = vsel %vm938_vm0, %v775_v23, 0  ;;  %v973_v52 = vsel %vm938_vm0, %v777_v55, 0 }
  0x36   : > { %1575 = vmatprep.subr.msk.bf16.mxu0 %vm938_vm0, %v783_v60  ;;  %v784_v60 = vpack.c.bf16 %v767_v26, %v766_v25 }
  0x37   : > { %652 = vst.msk [vmem:[#allocation2 + $0x12] ss:$8 sm:$0x3] %vm1760_vm1, %v649_v53  ;;  %1350 = vperm.xlu0 %1589, %v1347_v31  }
  0x38   : > { %v733_v34 = vld [vmem:[#allocation2 + $0x8] sm:$0xff]  ;;  %v732_v35 = vld [vmem:[#allocation2] sm:$0xff] }
  0x3d   : > { %1541 = vmatpush3.bf16.xpose.msra.mxu0 %v967_v48 }
  0x3e   : > { %1576 = vmatprep.subr.msk.bf16.mxu0 %vm938_vm0, %v784_v60  ;;  %v735_v38 = vld [vmem:[#allocation2 + $0x18] sm:$0x7f]  ;;  %v734_v40 = vld [vmem:[#allocation2 + $0x10] sm:$0x7f] }
  0x3f   : > { %v737_v41 = vpack.c.bf16 %v735_v38, %v733_v34  ;;  %v736_v42 = vpack.c.bf16 %v734_v40, %v732_v35 }
  0x41   : > { %v843_v47 = vand.u32 %v838_v39, %v737_v41  ;;  %v840_v51 = vand.u32 %v838_v39, %v736_v42 }
  0x43   : > { %845 = vmatprep.subr.bf16.mxu1 %v843_v47 }
  0x44   : > { %846 = vmatpush1.bf16.msra.mxu1 %v840_v51 }
  0x45   : > { %1543 = vmatpush3.bf16.xpose.msra.mxu0 %v970_v43 }
  0x46   : > { %1577 = vmatprep.subr.msk.bf16.mxu0 %vm938_vm0, %v785_v44 }
  0x47   : > { %1505 = vmatmul.mubr.msk.bf16.vlgmr.msra.gmra.mrb[0].mxu1 %vm822_vm4, %v1591_v54 }
  0x48   : > { %887 = vmatprep.mubr.bf16.mxu1 %v1619_v0 }
  0x4d   : > { %1545 = vmatpush3.bf16.xpose.msra.mxu0 %v973_v52 }
  0x4f   : > { %1506 = vmatmul.mubr.msk.bf16.gmra.mrb[4].mxu1 %vm822_vm4, %v1593_v56 }
  0x50   : > { %897 = vmatprep.mubr.bf16.mxu1 %v1619_v0 }
  0x54   : > { %1547 = vmatmul.mubr.msk.bf16.vlgmr.msra.gmra.mrb[0].mxu0 %vm938_vm0, %v1686_v1  ;;  %v1597_v1 = vld [vmem:[%s1961_s3 + $0x18] sm:$0xff]  }
  0x55   : > { %1548 = vmatprep.mubr.msk.bf16.mxu0 %vm938_vm0, %v1594_v57 }
  0x57   : > { %1507 = vmatmul.mubr.msk.bf16.gmra.mrb[8].mxu1 %vm822_vm4, %v1595_v59 }
  0x58   : > { %907 = vmatprep.mubr.bf16.mxu1 %v1619_v0 }
  0x5c   : > { %1549 = vmatmul.mubr.msk.bf16.gmra.mrb[4].mxu0 %vm938_vm0, %v1594_v57 }
  0x5d   : > { %1550 = vmatprep.mubr.msk.bf16.mxu0 %vm938_vm0, %v1596_v61 }
  0x5f   : > { %1508 = vmatmul.mubr.msk.bf16.gmra.mrb[12].mxu1 %vm822_vm4, %v1597_v1 }
  0x60   : > { %1281 = vmatprep.mubr.bf16.mxu1 %v1619_v0 }
  0x64   : > { %1551 = vmatmul.mubr.msk.bf16.gmra.mrb[8].mxu0 %vm938_vm0, %v1596_v61 }
  0x65   : > { %1552 = vmatprep.mubr.msk.bf16.mxu0 %vm938_vm0, %v1598_v62 }
  0x6c   : > { %1553 = vmatmul.mubr.msk.bf16.gmra.mrb[12].mxu0 %vm938_vm0, %v1598_v62 }
  0x87   : > { %v1083_v6 = vpop.permute.xlu0 %1082  ;;  %v1093_v23 = vpop.permute.xlu1 %1092 }
  0x8b   : > { %v1088_v18 = vpop.permute.xlu0 %1087  ;;  %v1098_v36 = vpop.permute.xlu1 %1097 }
  0x8f   : > { %v1103_v57 = vpop.permute.xlu0 %1102 }
 0x11a   : > { %v879_v63 = vpop.f32.mrb[0].mxu1 }
 0x11b   : > { %v881_v2 = vpop.f32.mrb[1].mxu1 }
 0x11c   : > { %v883_v3 = vpop.f32.mrb[2].mxu1 }
 0x11d   : > { %v885_v4 = vpop.f32.mrb[3].mxu1 }
 0x122   : > { %v889_v5 = vpop.f32.mrb[4].mxu1 }
 0x123   : > { %v891_v7 = vpop.f32.mrb[5].mxu1 }
 0x124   : > { %v893_v8 = vpop.f32.mrb[6].mxu1 }
 0x125   : > { %v895_v10 = vpop.f32.mrb[7].mxu1 }
 0x127   : > { %v1033_v9 = vpop.f32.mrb[0].mxu0 }
 0x128   : > { %v1034_v11 = vadd.f32 %v1033_v9, %v879_v63  ;;  %v1035_v12 = vpop.f32.mrb[1].mxu0 }
 0x129   : > { %v1036_v13 = vadd.f32 %v1035_v12, %v881_v2  ;;  %v1037_v14 = vpop.f32.mrb[2].mxu0 }
 0x12a   : > { %v1120_v15 = vadd.f32 %v1083_v6, %v1034_v11  ;;  %v1038_v16 = vadd.f32 %v1037_v14, %v883_v3  ;;  %v1039_v17 = vpop.f32.mrb[3].mxu0  ;;  %v899_v22 = vpop.f32.mrb[8].mxu1 }
 0x12b   : > { %v1121_v19 = vadd.f32 %v1083_v6, %v1036_v13  ;;  %v1040_v20 = vadd.f32 %v1039_v17, %v885_v4  ;;  %v901_v24 = vpop.f32.mrb[9].mxu1  ;;  %v1108_v3 = vpop.permute.xlu1 %1107 }
 0x12c   : > { %v1122_v21 = vadd.f32 %v1088_v18, %v1038_v16  ;;  %v1136_v25 = vmax.f32 %v1120_v15, 0.0  ;;  %v903_v27 = vpop.f32.mrb[10].mxu1  ;;  %v1113_v16 = vpop.permute.xlu0 %1112 }
 0x12d   : > { %v1123_v53 = vadd.f32 %v1088_v18, %v1040_v20  ;;  %v1137_v28 = vmax.f32 %v1121_v19, 0.0  ;;  %v905_v48 = vpop.f32.mrb[11].mxu1 }
 0x12e   : > { %v1138_v26 = vmax.f32 %v1122_v21, 0.0 }
 0x12f   : > { %v1139_v45 = vmax.f32 %v1123_v53, 0.0  ;;  %v1043_v46 = vpop.f32.mrb[4].mxu0 }
 0x130   : > { %v1152_v60 = vpack.c.bf16 %v1138_v26, %v1136_v25  ;;  %v1044_v29 = vadd.f32 %v1043_v46, %v889_v5  ;;  %v1045_v30 = vpop.f32.mrb[5].mxu0 }
 0x131   : > { %v1046_v31 = vadd.f32 %v1045_v30, %v891_v7  ;;  %v1047_v58 = vpop.f32.mrb[6].mxu0  ;;  %v1153_v32 = vpack.c.bf16 %v1139_v45, %v1137_v28  ;;  %v1600_v30 = vld [vmem:[%s1963_s5 + $0x8] sm:$0xff]  }
 0x132   : > { %v1124_v33 = vadd.f32 %v1093_v23, %v1044_v29  ;;  %v1048_v34 = vadd.f32 %v1047_v58, %v893_v8  ;;  %v1049_v35 = vpop.f32.mrb[7].mxu0  ;;  %v909_v40 = vpop.f32.mrb[12].mxu1  ;;  %v1599_v29 = vld [vmem:[%s1963_s5] sm:$0xff]   ;;  %v1602_v58 = vld [vmem:[%s1963_s5 + $0x18] sm:$0xff]  }
 0x133   : > { %v1125_v37 = vadd.f32 %v1093_v23, %v1046_v31  ;;  %v1050_v38 = vadd.f32 %v1049_v35, %v895_v10  ;;  %1249 = vmatprep.subr.bf16.mxu1 %v1153_v32  ;;  %v911_v42 = vpop.f32.mrb[13].mxu1  ;;  %v1118_v23 = vpop.permute.xlu1 %1117  ;;  %v1601_v31 = vld [vmem:[%s1963_s5 + $0x10] sm:$0xff]  }
 0x134   : > { %v1126_v39 = vadd.f32 %v1098_v36, %v1048_v34  ;;  %1250 = vmatpush1.bf16.msra.mxu1 %v1152_v60  ;;  %v1140_v43 = vmax.f32 %v1124_v33, 0.0  ;;  %v913_v47 = vpop.f32.mrb[14].mxu1  ;;  %v1179_v32 = vpop.permute.xlu0 %1178 }
 0x135   : > { %v1127_v41 = vadd.f32 %v1098_v36, %v1050_v38  ;;  %v1141_v49 = vmax.f32 %v1125_v37, 0.0  ;;  %v915_v54 = vpop.f32.mrb[15].mxu1 }
 0x136   : > { %v1142_v44 = vmax.f32 %v1126_v39, 0.0 }
 0x137   : > { %v1143_v50 = vmax.f32 %v1127_v41, 0.0  ;;  %v1053_v51 = vpop.f32.mrb[8].mxu0  ;;  %v1184_v36 = vpop.permute.xlu1 %1183 }
 0x138   : > { %v1154_v55 = vpack.c.bf16 %v1142_v44, %v1140_v43  ;;  %v1054_v52 = vadd.f32 %v1053_v51, %v899_v22  ;;  %v1055_v56 = vpop.f32.mrb[9].mxu0 }
 0x139   : > { %v1056_v59 = vadd.f32 %v1055_v56, %v901_v24  ;;  %v1057_v61 = vpop.f32.mrb[10].mxu0  ;;  %v1155_v1 = vpack.c.bf16 %v1143_v50, %v1141_v49  ;;  %v1189_v50 = vpop.permute.xlu0 %1188 }
 0x13a   : > { %v1128_v62 = vadd.f32 %v1103_v57, %v1054_v52  ;;  %v1058_v63 = vadd.f32 %v1057_v61, %v903_v27  ;;  %v1059_v2 = vpop.f32.mrb[11].mxu0 }
 0x13b   : > { %v1129_v4 = vadd.f32 %v1103_v57, %v1056_v59  ;;  %v1060_v5 = vadd.f32 %v1059_v2, %v905_v48  ;;  %1251 = vmatprep.subr.bf16.mxu1 %v1155_v1  ;;  %v1194_v52 = vpop.permute.xlu1 %1193 }
 0x13c   : > { %v1130_v6 = vadd.f32 %v1108_v3, %v1058_v63  ;;  %1252 = vmatpush1.bf16.msra.mxu1 %v1154_v55  ;;  %v1144_v8 = vmax.f32 %v1128_v62, 0.0 }
 0x13d   : > { %v1131_v7 = vadd.f32 %v1108_v3, %v1060_v5  ;;  %v1145_v10 = vmax.f32 %v1129_v4, 0.0  ;;  %v1199_v5 = vpop.permute.xlu0 %1198 }
 0x13e   : > { %v1146_v9 = vmax.f32 %v1130_v6, 0.0 }
 0x13f   : > { %v1147_v11 = vmax.f32 %v1131_v7, 0.0  ;;  %v1063_v12 = vpop.f32.mrb[12].mxu0 }
 0x140   : > { %v1156_v13 = vpack.c.bf16 %v1146_v9, %v1144_v8  ;;  %v1064_v14 = vadd.f32 %v1063_v12, %v909_v40  ;;  %v1065_v15 = vpop.f32.mrb[13].mxu0 }
 0x141   : > { %v1066_v17 = vadd.f32 %v1065_v15, %v911_v42  ;;  %v1067_v18 = vpop.f32.mrb[14].mxu0  ;;  %v1157_v19 = vpack.c.bf16 %v1147_v11, %v1145_v10  ;;  %v1204_v10 = vpop.permute.xlu1 %1203 }
 0x142   : > { %v1132_v20 = vadd.f32 %v1113_v16, %v1064_v14  ;;  %v1068_v21 = vadd.f32 %v1067_v18, %v913_v47  ;;  %v1069_v22 = vpop.f32.mrb[15].mxu0 }
 0x143   : > { %v1133_v53 = vadd.f32 %v1113_v16, %v1066_v17  ;;  %v1070_v24 = vadd.f32 %v1069_v22, %v915_v54  ;;  %1253 = vmatprep.subr.bf16.mxu1 %v1157_v19 }
 0x144   : > { %v1134_v25 = vadd.f32 %v1118_v23, %v1068_v21  ;;  %1254 = vmatpush1.bf16.msra.mxu1 %v1156_v13  ;;  %v1148_v27 = vmax.f32 %v1132_v20, 0.0  ;;  %v1209_v21 = vpop.permute.xlu0 %1208 }
 0x145   : > { %v1135_v26 = vadd.f32 %v1118_v23, %v1070_v24  ;;  %v1149_v45 = vmax.f32 %v1133_v53, 0.0 }
 0x146   : > { %v1150_v28 = vmax.f32 %v1134_v25, 0.0  ;;  %v1214_v25 = vpop.permute.xlu1 %1213 }
 0x147   : > { %v1151_v46 = vmax.f32 %v1135_v26, 0.0 }
 0x148   : > { %v1158_v48 = vpack.c.bf16 %v1150_v28, %v1148_v27 }
 0x149   : > { %v1159_v60 = vpack.c.bf16 %v1151_v46, %v1149_v45 }
 0x14b   : > { %1255 = vmatprep.subr.bf16.mxu1 %v1159_v60 }
 0x14c   : > { %1256 = vmatpush1.bf16.msra.mxu1 %v1158_v48 }
 0x14f   : > { %1521 = vmatmul.mubr.msk.bf16.vlgmr.msra.gmra.mrb[16].mxu1 %vm1236_vm5, %v1599_v29 }
 0x150   : > { %1291 = vmatprep.mubr.bf16.mxu1 %v1619_v0 }
 0x157   : > { %1522 = vmatmul.mubr.msk.bf16.gmra.mrb[20].mxu1 %vm1236_vm5, %v1600_v30 }
 0x158   : > { %1301 = vmatprep.mubr.bf16.mxu1 %v1619_v0 }
 0x15f   : > { %1523 = vmatmul.mubr.msk.bf16.gmra.mrb[24].mxu1 %vm1236_vm5, %v1601_v31 }
 0x160   : > { %1311 = vmatprep.mubr.bf16.mxu1 %v1619_v0 }
 0x167   : > { %1524 = vmatmul.mubr.msk.bf16.gmra.mrb[28].mxu1 %vm1236_vm5, %v1602_v58 }
 0x168   : > { %1388 = vmatprep.mubr.bf16.mxu1 %v1619_v0 }
 0x222   : > { %v1283_v33 = vpop.f32.mrb[16].mxu1 }
 0x223   : > { %v1284_v34 = vadd.f32 %v1283_v33, %v1179_v32  ;;  %v1285_v35 = vpop.f32.mrb[17].mxu1  ;;  %v1351_v33 = vpop.permute.xlu0 %1350 }
 0x224   : > { %v1286_v37 = vadd.f32 %v1285_v35, %v1179_v32  ;;  %v1287_v38 = vpop.f32.mrb[18].mxu1  ;;  %v1346_v32 = vld [vmem:[%s1965_s7] sm:$0x3] }
 0x225   : > { %v1288_v39 = vadd.f32 %v1287_v38, %v1184_v36  ;;  %v1289_v40 = vpop.f32.mrb[19].mxu1  ;;  %v1322_v42 = vmax.f32 %v1284_v34, 0.0 }
 0x226   : > { %v1290_v41 = vadd.f32 %v1289_v40, %v1184_v36  ;;  %v1323_v44 = vmax.f32 %v1286_v37, 0.0 }
 0x227   : > { %v1324_v43 = vmax.f32 %v1288_v39, 0.0 }
 0x228   : > { %v1325_v47 = vmax.f32 %v1290_v41, 0.0 }
 0x229   : > { %v1338_v49 = vpack.c.bf16 %v1324_v43, %v1322_v42 }
 0x22a   : > { %v1339_v51 = vpack.c.bf16 %v1325_v47, %v1323_v44  ;;  %v1293_v54 = vpop.f32.mrb[20].mxu1 }
 0x22b   : > { %v1294_v55 = vadd.f32 %v1293_v54, %v1189_v50  ;;  %v1295_v0 = vpop.f32.mrb[21].mxu1 }
 0x22c   : > { %v1296_v56 = vadd.f32 %v1295_v0, %v1189_v50  ;;  %v1297_v57 = vpop.f32.mrb[22].mxu1  ;;  %1356 = vmatprep.subr.bf16.mxu1 %v1339_v51 }
 0x22d   : > { %v1298_v59 = vadd.f32 %v1297_v57, %v1194_v52  ;;  %v1299_v61 = vpop.f32.mrb[23].mxu1  ;;  %1357 = vmatpush1.bf16.msra.mxu1 %v1338_v49  ;;  %v1326_v62 = vmax.f32 %v1294_v55, 0.0 }
 0x22e   : > { %v1300_v1 = vadd.f32 %v1299_v61, %v1194_v52  ;;  %v1327_v2 = vmax.f32 %v1296_v56, 0.0 }
 0x22f   : > { %v1328_v63 = vmax.f32 %v1298_v59, 0.0 }
 0x230   : > { %v1329_v3 = vmax.f32 %v1300_v1, 0.0 }
 0x231   : > { %v1340_v4 = vpack.c.bf16 %v1328_v63, %v1326_v62 }
 0x232   : > { %v1341_v6 = vpack.c.bf16 %v1329_v3, %v1327_v2  ;;  %v1303_v7 = vpop.f32.mrb[24].mxu1 }
 0x233   : > { %v1304_v8 = vadd.f32 %v1303_v7, %v1199_v5  ;;  %v1305_v9 = vpop.f32.mrb[25].mxu1 }
 0x234   : > { %v1306_v11 = vadd.f32 %v1305_v9, %v1199_v5  ;;  %v1307_v12 = vpop.f32.mrb[26].mxu1  ;;  %1358 = vmatprep.subr.bf16.mxu1 %v1341_v6 }
 0x235   : > { %v1308_v13 = vadd.f32 %v1307_v12, %v1204_v10  ;;  %v1309_v14 = vpop.f32.mrb[27].mxu1  ;;  %1359 = vmatpush1.bf16.msra.mxu1 %v1340_v4  ;;  %v1330_v16 = vmax.f32 %v1304_v8, 0.0 }
 0x236   : > { %v1310_v15 = vadd.f32 %v1309_v14, %v1204_v10  ;;  %v1331_v18 = vmax.f32 %v1306_v11, 0.0 }
 0x237   : > { %v1332_v17 = vmax.f32 %v1308_v13, 0.0 }
 0x238   : > { %v1333_v19 = vmax.f32 %v1310_v15, 0.0 }
 0x239   : > { %v1342_v20 = vpack.c.bf16 %v1332_v17, %v1330_v16 }
 0x23a   : > { %v1343_v22 = vpack.c.bf16 %v1333_v19, %v1331_v18  ;;  %v1313_v23 = vpop.f32.mrb[28].mxu1 }
 0x23b   : > { %v1314_v53 = vadd.f32 %v1313_v23, %v1209_v21  ;;  %v1315_v24 = vpop.f32.mrb[29].mxu1 }
 0x23c   : > { %v1316_v26 = vadd.f32 %v1315_v24, %v1209_v21  ;;  %v1317_v27 = vpop.f32.mrb[30].mxu1  ;;  %1360 = vmatprep.subr.bf16.mxu1 %v1343_v22 }
 0x23d   : > { %v1318_v28 = vadd.f32 %v1317_v27, %v1214_v25  ;;  %v1319_v45 = vpop.f32.mrb[31].mxu1  ;;  %1361 = vmatpush1.bf16.msra.mxu1 %v1342_v20  ;;  %v1334_v48 = vmax.f32 %v1314_v53, 0.0 }
 0x23e   : > { %v1320_v46 = vadd.f32 %v1319_v45, %v1214_v25  ;;  %v1335_v29 = vmax.f32 %v1316_v26, 0.0 }
 0x23f   : > { %v1336_v60 = vmax.f32 %v1318_v28, 0.0 }
 0x240   : > { %v1337_v30 = vmax.f32 %v1320_v46, 0.0 }
 0x241   : > { %v1344_v31 = vpack.c.bf16 %v1336_v60, %v1334_v48 }
 0x242   : > { %v1345_v58 = vpack.c.bf16 %v1337_v30, %v1335_v29 }
 0x244   : > { %1362 = vmatprep.subr.bf16.mxu1 %v1345_v58 }
 0x245   : > { %1363 = vmatpush1.bf16.msra.mxu1 %v1344_v31 }
 0x248   : > { %1525 = vmatmul.mubr.msk.bf16.vlgmr.msra.gmra.mrb[32].mxu1 %vm1236_vm5, %v1346_v32 }
 0x31b   : > { %v1390_v34 = vpop.f32.mrb[32].mxu1 }
 0x31c   : > { %v1391_v35 = vadd.f32 %v1390_v34, %v1351_v33  ;;  %v1392_v36 = vpop.f32.mrb[33].mxu1 }
 0x31d   : > { %v1393_v37 = vadd.f32 %v1392_v36, %v1351_v33  ;;  %v1394_v38 = vpop.f32.mrb[34].mxu1 }
 0x31e   : > { %v1526_v39 = vmul.f32 -1.442695, %v1391_v35  ;;  %v1395_v40 = vpop.f32.mrb[35].mxu1 }
 0x31f   : > { %v1527_v41 = vmul.f32 -1.442695, %v1393_v37 }
 0x320   : > { %1603 = vpow2.f32 %v1526_v39 }
 0x321   : > { %1605 = vpow2.f32 %v1527_v41 }
 0x32a   : > { %v1604_v42 = vpop.eup %1603 }
 0x32b   : > { %v1606_v43 = vpop.eup %1605  ;;  %v1403_v44 = vadd.f32 1.0, %v1604_v42 }
 0x32c   : > { %v1404_v47 = vadd.f32 1.0, %v1606_v43 }
 0x32d   : > { %1607 = vrcp.f32 %v1403_v44 }
 0x32e   : > { %1609 = vrcp.f32 %v1404_v47 }
 0x337   : > { %v1608_v49 = vpop.eup %1607 }
 0x338   : > { %v1610_v50 = vpop.eup %1609 }
 0x339   : > { %v1411_v51 = vcombine.low %v1608_v49, %v1610_v50 }
 0x33b   : > { %1413 = vst [vmem:[%s376_s10] sm:$0x77] %v1411_v51 }
 0x33c PF: > { %s19_s30 = sadd.s32 1, %s1617_s30  }
 0x33d   : > { %p16_p5 = scmp.ge.s32.totalorder %s19_s30, 4  }
 0x33f   :  { %18 = sbr.rel (!%p16_p5) target bundleno = 1 (0x1), region = 103 }

</bundles_post_ra>
